<compile_context>
chip_gen: v5e
topology: v5e:2x2
jax: 0.10.0
libtpu: 0.0.40
codegen_flags: <defaults>
</compile_context>

<pallas_src>
import jax
import jax.numpy as jnp
import numpy as np
from jax.experimental import pallas as pl
from jax.experimental.pallas import tpu as pltpu

# ---- small, self-consistent sizes ------------------------------------------
ENC_HID = 32          # bi-directional encoder -> feature dim = 2 * ENC_HID = 64
DEC_HID = 32
SRC_LEN = 8           # multiple of 8 -> flat<->3D f32 reshapes are layout no-ops
BATCH   = 16

MXU_DTYPE = jnp.bfloat16   # MXU-path inputs; elementwise math stays f32


# ---- Pallas kernel: the whole attention forward (+ fused context) -----------
def _attention_kernel(enc_ref, hid_ref, w_ref, bv_ref, attn_ref, ctx_ref):
    f32 = jnp.float32
    B, S = attn_ref.shape
    E2 = enc_ref.shape[-1]
    H = hid_ref.shape[-1]

    enc_flat = enc_ref[...]               # [B*S, E2]  bf16 (flattened in wrapper)
    hid = hid_ref[...]                    # [B, H]     bf16
    # Static slices of the packed slab; the split point H is a multiple of the
    # bf16 sublane tile (16), so no relayout is forced.
    w_h = w_ref[:H, :]                    # [H, H]     bf16  (hidden path)
    w_e = w_ref[H:, :]                    # [E2, H]    bf16  (encoder path)
    b = bv_ref[0:1, :]                    # [1, H]     f32
    v = bv_ref[1:2, :]                    # [1, H]     f32

    # Hidden-path term: once per batch row, bias folded in, f32 accumulation.
    h_term = jnp.dot(hid, w_h, preferred_element_type=f32) + b            # [B, H]

    # Encoder-path term: one MXU matmul over all (batch, seq) rows — the input
    # arrives already flat, so no in-kernel reshape of the bf16 tile is needed.
    e_term = jnp.dot(enc_flat, w_e, preferred_element_type=f32)           # [B*S, H]
    e_term = e_term.reshape(B, S, H)      # f32, S == 8 sublanes -> layout no-op

    energy = jnp.tanh(e_term + h_term[:, None, :])                        # [B, S, H]

    # v-projection as a lane (XLU) reduce instead of a third tiny matmul.
    scores = jnp.sum(energy * v[None, :, :], axis=-1)                     # [B, S]

    # Numerically-stable softmax over the source axis; exact normalization
    # (the [B,1] divide is negligible and keeps row sums exact for the context).
    scores = scores - jnp.max(scores, axis=-1, keepdims=True)
    ez = jnp.exp(scores)
    p = ez / jnp.sum(ez, axis=-1, keepdims=True)                          # [B, S]
    attn_ref[...] = p

    # Fused downstream context: per-batch [1,S] @ [S,E2] on the MXU.
    # Cast to f32 BEFORE reshaping so the reshape stays a layout no-op.
    enc3 = enc_flat.astype(f32).reshape(B, S, E2)                         # [B, S, E2]
    ctx_ref[...] = jnp.einsum('bqs,bse->bqe', p[:, None, :], enc3,
                              preferred_element_type=f32)                 # [B, 1, E2]


# ---- parameter construction & one-time packing ------------------------------
def init_params(key):
    ks = jax.random.split(key, 3)
    s = 0.1
    he2 = 2 * ENC_HID
    return dict(
        # attention: Linear(dec_hid + 2*enc_hid -> dec_hid) over cat(hidden, enc)
        attn_w=jax.random.normal(ks[0], (DEC_HID, DEC_HID + he2), jnp.float32) * s,
        attn_b=jax.random.normal(ks[1], (DEC_HID,), jnp.float32) * s,
        attn_v=jax.random.normal(ks[2], (1, DEC_HID), jnp.float32) * s,   # Linear(dec_hid->1, no bias)
    )


def pack_params(params):
    """Done once, outside jit: kernel-layout weight slabs (MXU path in bf16)."""
    H = params['attn_b'].shape[0]
    # Keep the slab's split point on a bf16 sublane-tile boundary (pad if not).
    assert H % 16 == 0, "pad DEC_HID (slab split point) to a multiple of 16"
    w_all = params['attn_w'].T.astype(MXU_DTYPE)                          # [H + 2*ENC_HID, H]
    bv = jnp.stack([params['attn_b'], params['attn_v'][0]], 0).astype(jnp.float32)  # [2, H]
    return w_all, bv


# ---- wrapper ----------------------------------------------------------------
@jax.jit
def attention_forward(encoder_outputs, hidden, w_all, bv):
    B, S, E2 = encoder_outputs.shape
    assert S % 8 == 0 and B % 8 == 0

    # bf16 MXU-path inputs, flattened OUTSIDE the kernel (the reshape fuses
    # into the cast / is metadata-only in HBM).  Production callers would
    # typically already hold bf16 activations.
    enc_flat = encoder_outputs.astype(MXU_DTYPE).reshape(B * S, E2)
    hid_lo = hidden.astype(MXU_DTYPE)

    attn, ctx = pl.pallas_call(
        _attention_kernel,
        in_specs=[pl.BlockSpec(memory_space=pltpu.MemorySpace.VMEM)] * 4,
        out_specs=(pl.BlockSpec(memory_space=pltpu.MemorySpace.VMEM),
                   pl.BlockSpec(memory_space=pltpu.MemorySpace.VMEM)),
        out_shape=(jax.ShapeDtypeStruct((B, S), jnp.float32),      # attention weights
                   jax.ShapeDtypeStruct((B, 1, E2), jnp.float32)),  # fused context
    )(enc_flat, hid_lo, w_all, bv)
    return attn, ctx[:, 0, :]


# ---- pure-JAX reference (mirrors the PyTorch forward) ------------------------
def reference_forward(encoder_outputs, hidden, params):
    B, S, _ = encoder_outputs.shape
    H = hidden.shape[1]
    h_rep = jnp.broadcast_to(hidden[:, None, :], (B, S, H))
    energy = jnp.tanh(
        jnp.concatenate([h_rep, encoder_outputs], axis=2) @ params['attn_w'].T
        + params['attn_b'])
    attention = (energy @ params['attn_v'].T)[..., 0]
    attn = jax.nn.softmax(attention, axis=1)
    ctx = jnp.einsum('bs,bse->be', attn, encoder_outputs)
    return attn, ctx


if __name__ == "__main__":
    key = jax.random.PRNGKey(0)
    k_par, k_enc, k_hid = jax.random.split(key, 3)

    params = init_params(k_par)
    encoder_outputs = jax.random.normal(
        k_enc, (BATCH, SRC_LEN, 2 * ENC_HID), jnp.float32)             # [B, S, 2*ENC_HID]
    hidden = jax.random.normal(k_hid, (BATCH, DEC_HID), jnp.float32)   # [B, H]

    w_all, bv = pack_params(params)                                    # one-time packing

    attn, ctx = attention_forward(encoder_outputs, hidden, w_all, bv)
    jax.block_until_ready((attn, ctx))

    attn_ref, ctx_ref = reference_forward(encoder_outputs, hidden, params)
    # bf16 MXU inputs -> relaxed tolerances (elementwise math is f32).
    assert np.allclose(np.asarray(attn), np.asarray(attn_ref), rtol=2e-2, atol=2e-2)
    assert np.allclose(np.asarray(ctx), np.asarray(ctx_ref), rtol=5e-2, atol=5e-2)
    # exact normalization -> attention rows sum to 1 tightly
    assert np.allclose(np.asarray(attn).sum(axis=1), 1.0, rtol=1e-5, atol=1e-5)

    print("KERNEL_OK")
</pallas_src>

<mosaic_0001>
module attributes {stable_mosaic.version = 11 : i64} {
  func.func @_attention_kernel(%arg0: memref<128x64xbf16, #tpu.memory_space<vmem>>, %arg1: memref<16x32xbf16, #tpu.memory_space<vmem>>, %arg2: memref<96x32xbf16, #tpu.memory_space<vmem>>, %arg3: memref<2x32xf32, #tpu.memory_space<vmem>>, %arg4: memref<16x8xf32, #tpu.memory_space<vmem>>, %arg5: memref<16x1x64xf32, #tpu.memory_space<vmem>>) attributes {dimension_semantics = [], scalar_prefetch = 0 : i64, scratch_operands = 0 : i64, tpu.core_type = #tpu.core_type<tc>} {
    %c0 = arith.constant 0 : index
    %c0_0 = arith.constant 0 : index
    %0 = vector.load %arg0[%c0, %c0_0] : memref<128x64xbf16, #tpu.memory_space<vmem>>, vector<128x64xbf16>
    %c0_1 = arith.constant 0 : index
    %c0_2 = arith.constant 0 : index
    %1 = vector.load %arg1[%c0_1, %c0_2] : memref<16x32xbf16, #tpu.memory_space<vmem>>, vector<16x32xbf16>
    %c0_3 = arith.constant 0 : index
    %c0_4 = arith.constant 0 : index
    %2 = vector.load %arg2[%c0_3, %c0_4] : memref<96x32xbf16, #tpu.memory_space<vmem>>, vector<32x32xbf16>
    %c32 = arith.constant 32 : index
    %c0_5 = arith.constant 0 : index
    %3 = vector.load %arg2[%c32, %c0_5] : memref<96x32xbf16, #tpu.memory_space<vmem>>, vector<64x32xbf16>
    %c0_6 = arith.constant 0 : index
    %c0_7 = arith.constant 0 : index
    %4 = vector.load %arg3[%c0_6, %c0_7] : memref<2x32xf32, #tpu.memory_space<vmem>>, vector<1x32xf32>
    %c1 = arith.constant 1 : index
    %c0_8 = arith.constant 0 : index
    %5 = vector.load %arg3[%c1, %c0_8] : memref<2x32xf32, #tpu.memory_space<vmem>>, vector<1x32xf32>
    %cst = arith.constant dense<0.000000e+00> : vector<16x32xf32>
    %6 = tpu.matmul %1, %2, %cst {dimension_numbers = #tpu.dot_dimension_numbers<[1], [0], [0], [1], [0, 0, 1, 1], [], []>} : vector<16x32xbf16>, vector<32x32xbf16>, vector<16x32xf32> -> vector<16x32xf32>
    %7 = vector.broadcast %4 : vector<1x32xf32> to vector<16x32xf32>
    %8 = arith.addf %6, %7 : vector<16x32xf32>
    %cst_9 = arith.constant dense<0.000000e+00> : vector<128x32xf32>
    %9 = tpu.matmul %0, %3, %cst_9 {dimension_numbers = #tpu.dot_dimension_numbers<[1], [0], [0], [1], [0, 0, 1, 1], [], []>} : vector<128x64xbf16>, vector<64x32xbf16>, vector<128x32xf32> -> vector<128x32xf32>
    %10 = vector.shape_cast %9 : vector<128x32xf32> to vector<16x8x32xf32>
    %11 = vector.shape_cast %8 : vector<16x32xf32> to vector<16x1x32xf32>
    %12 = vector.broadcast %11 : vector<16x1x32xf32> to vector<16x8x32xf32>
    %13 = arith.addf %10, %12 : vector<16x8x32xf32>
    %14 = math.tanh %13 : vector<16x8x32xf32>
    %15 = vector.shape_cast %5 : vector<1x32xf32> to vector<1x1x32xf32>
    %16 = vector.broadcast %15 : vector<1x1x32xf32> to vector<16x8x32xf32>
    %17 = arith.mulf %14, %16 : vector<16x8x32xf32>
    %cst_10 = arith.constant dense<0.000000e+00> : vector<16x8xf32>
    %18 = vector.multi_reduction <add>, %17, %cst_10 [2] : vector<16x8x32xf32> to vector<16x8xf32>
    %cst_11 = arith.constant dense<0xFF800000> : vector<16xf32>
    %19 = vector.multi_reduction <maximumf>, %18, %cst_11 [1] : vector<16x8xf32> to vector<16xf32>
    %20 = vector.shape_cast %19 : vector<16xf32> to vector<16x1xf32>
    %21 = vector.broadcast %20 : vector<16x1xf32> to vector<16x8xf32>
    %22 = arith.subf %18, %21 : vector<16x8xf32>
    %23 = math.exp %22 : vector<16x8xf32>
    %cst_12 = arith.constant dense<0.000000e+00> : vector<16xf32>
    %24 = vector.multi_reduction <add>, %23, %cst_12 [1] : vector<16x8xf32> to vector<16xf32>
    %25 = vector.shape_cast %24 : vector<16xf32> to vector<16x1xf32>
    %26 = vector.broadcast %25 : vector<16x1xf32> to vector<16x8xf32>
    %27 = arith.divf %23, %26 : vector<16x8xf32>
    %c0_13 = arith.constant 0 : index
    %c0_14 = arith.constant 0 : index
    %28 = vector.load %arg4[%c0_13, %c0_14] : memref<16x8xf32, #tpu.memory_space<vmem>>, vector<16x8xf32>
    tpu.vector_store %arg4[%c0_13, %c0_14], %27 {strides = array<i32>} : memref<16x8xf32, #tpu.memory_space<vmem>>, vector<16x8xf32>,
    %29 = arith.extf %0 : vector<128x64xbf16> to vector<128x64xf32>
    %30 = vector.shape_cast %29 : vector<128x64xf32> to vector<16x8x64xf32>
    %31 = vector.shape_cast %27 : vector<16x8xf32> to vector<16x1x8xf32>
    "tpu.trace_start"() <{level = 10 : i32, message = "bqs,bse->bqe"}> : () -> ()
    %cst_15 = arith.constant dense<0.000000e+00> : vector<16x1x64xf32>
    %32 = tpu.matmul %31, %30, %cst_15 {dimension_numbers = #tpu.dot_dimension_numbers<[2], [1], [1], [2], [0, 0, 0, 1, 1, 2], [0], [0]>} : vector<16x1x8xf32>, vector<16x8x64xf32>, vector<16x1x64xf32> -> vector<16x1x64xf32>
    "tpu.trace_stop"() : () -> ()
    %c0_16 = arith.constant 0 : index
    %c0_17 = arith.constant 0 : index
    %c0_18 = arith.constant 0 : index
    %33 = vector.load %arg5[%c0_16, %c0_17, %c0_18] : memref<16x1x64xf32, #tpu.memory_space<vmem>>, vector<16x1x64xf32>
    tpu.vector_store %arg5[%c0_16, %c0_17, %c0_18], %32 {strides = array<i32>} : memref<16x1x64xf32, #tpu.memory_space<vmem>>, vector<16x1x64xf32>,
    return
  }
}

</mosaic_0001>

<bundles_post_ra>
// kernel: attention_forward.1
= control target key start
LH: loop header
LB: loop body
LE: loop exit
PB: predicated region body
PF: predicated region fallthrough
CT: control target
= control target key end

     0   :  { %s2348_s0 = inlined_call_operand.vmem [shape: bf16[128,64], index: 0, kind: input, shape index: {}]   ;;  %s2349_s1 = inlined_call_operand.vmem [shape: bf16[16,32], index: 1, kind: input, shape index: {}]   ;;  %s2350_s2 = inlined_call_operand.vmem [shape: bf16[96,32], index: 2, kind: input, shape index: {}]   ;;  %s2351_s3 = inlined_call_operand.vmem [shape: f32[2,32], index: 3, kind: input, shape index: {}]   ;;  %s2352_s4 = inlined_call_operand.vmem [shape: f32[16,8], index: 4, kind: output, shape index: {0}]   ;;  %s2353_s5 = inlined_call_operand.hbm [shape: f32[16,1,64], index: 5, kind: output, shape index: {1}]  }
   0x1   :  { %v1494_v0 = vld [vmem:[%s2350_s2 + $0x8] sm:$0xff]  ;;  %v1493_v2 = vld [vmem:[%s2350_s2] sm:$0xff] }
   0x2   :  { %v1498_v1 = vld [vmem:[%s2350_s2 + $0x28] sm:$0xff]  ;;  %81 = vmatpush.bf16.msra.mxu0 %v1494_v0  ;;  %v1497_v3 = vld [vmem:[%s2350_s2 + $0x20] sm:$0xff] }
   0x3   :  { %1499 = vmatpush.bf16.msra.mxu1 %v1498_v1  ;;  %1500 = vmatpush.bf16.msra.mxu2 %v1498_v1  ;;  %v1492_v4 = vld [vmem:[%s2349_s1] sm:$0xff] }
   0x4   :  { %1501 = vmatpush.bf16.msra.mxu3 %v1498_v1 }
   0x5   :  { %11 = vsyncpa [#allocation3], 0  ;;  %vm71_vm0 = vcmask 261120   ;;  %v1496_v5 = vld [vmem:[%s2350_s2 + $0x18] sm:$0xff]  ;;  %v1495_v6 = vld [vmem:[%s2350_s2 + $0x10] sm:$0xff]  ;;  %vm153_vm1 = vcmask 523264  }
   0x6   :  { %82 = vmatpush.bf16.msra.mxu0 %v1493_v2  ;;  %v1486_v7 = vld [vmem:[%s2348_s0 + $0x10] sm:$0xff]  ;;  %v1491_v9 = vld [vmem:[%s2348_s0 + $0x38] sm:$0xff]  ;;  %v1484_v10 = vld [vmem:[%s2348_s0] sm:$0xff]  ;;  %vm406_vm2 = vcmask 1041409   ;;  %vm408_vm3 = vcmask 1042434   ;;  %vm410_vm4 = vcmask 1043459  }
   0x7   :  { %1502 = vmatpush.bf16.msra.mxu1 %v1497_v3  ;;  %1503 = vmatpush.bf16.msra.mxu2 %v1497_v3  ;;  %v1490_v8 = vld [vmem:[%s2348_s0 + $0x30] sm:$0xff]  ;;  %v1487_v11 = vld [vmem:[%s2348_s0 + $0x18] sm:$0xff]  ;;  %v1485_v12 = vld [vmem:[%s2348_s0 + $0x8] sm:$0xff]  ;;  %vm412_vm5 = vcmask 1044484   ;;  %vm2356_vm6 = vcmask 1045509   ;;  %vm2355_vm7 = vcmask 1046534  }
   0x8   :  { %1504 = vmatpush.bf16.msra.mxu3 %v1497_v3  ;;  %v1488_v13 = vld [vmem:[%s2348_s0 + $0x20] sm:$0xff]  ;;  %v1489_v14 = vld [vmem:[%s2348_s0 + $0x28] sm:$0xff]  ;;  %vm2354_vm8 = vcmask 1047559   ;;  %vm429_vm9 = vcmask 64512   ;;  %s1385_s21 = sshll.u32 %s2353_s5, 4  ;;  %s1644_s22 = smov 16   ;;  %s1386_s21 = int_to_ptr.hbm [resolvable:$true] %s1385_s21 }
   0x9   :  { %1411 = vmatmul.msk.bf16.vlgmr.msra.gmra.mxu0 %vm71_vm0, %v1492_v4  ;;  %v1518_v15 = vld [vmem:[%s2351_s3] ss:$0 sm:$0xff]  ;;  %v1740_v24 = vld [vmem:[%s2351_s3 + $0x1] ss:$0 sm:$0xff]  ;;  %s1645_s23 = smov 1  }
   0xa   :  { %182 = vmatpush.bf16.msrb.mxu0 %v1498_v1 }
   0xb   :  { %1505 = vmatpush.bf16.msra.mxu1 %v1496_v5  ;;  %1506 = vmatpush.bf16.msra.mxu2 %v1496_v5 }
   0xc   :  { %1507 = vmatpush.bf16.msra.mxu3 %v1496_v5 }
   0xe   :  { %183 = vmatpush.bf16.msrb.mxu0 %v1497_v3 }
   0xf   :  { %1508 = vmatpush.bf16.msra.mxu1 %v1495_v6  ;;  %1509 = vmatpush.bf16.msra.mxu2 %v1495_v6 }
  0x10   :  { %1510 = vmatpush.bf16.msra.mxu3 %v1495_v6 }
  0x12   :  { %184 = vmatpush.bf16.msrb.mxu0 %v1496_v5  ;;  %1462 = vmatmul.msk.bf16.vlgmr.msra.gmra.mxu1 %vm153_vm1, %v1486_v7 }
  0x13   :  { %1466 = vmatmul.msk.bf16.vlgmr.msra.gmra.mxu2 %vm153_vm1, %v1490_v8  ;;  %1467 = vmatmul.msk.bf16.vlgmr.msra.gmra.mxu3 %vm153_vm1, %v1491_v9 }
  0x16   :  { %185 = vmatpush.bf16.msrb.mxu0 %v1495_v6 }
  0x19   :  { %1460 = vmatmul.msk.bf16.vlgmr.msrb.gmra.mxu0 %vm153_vm1, %v1484_v10 }
  0x22   :  { %1463 = vmatmul.msk.bf16.gmra.mxu1 %vm153_vm1, %v1487_v11 }
  0x29   :  { %1461 = vmatmul.msk.bf16.gmra.mxu0 %vm153_vm1, %v1485_v12 }
  0x32   :  { %1464 = vmatmul.msk.bf16.gmra.mxu1 %vm153_vm1, %v1488_v13 }
  0x42   :  { %1465 = vmatmul.msk.bf16.gmra.mxu1 %vm153_vm1, %v1489_v14 }
  0x86   :  { %v84_v16 = vpop.f32.mrf.mxu0 }
  0x87   :  { %v1733_v17 = vadd.f32 %v1518_v15, %v84_v16 }
  0x89   :  { %v232_v18 = vrot.slane %v1733_v17, 4  ;;  %v233_v23 = vrot.slane %v1733_v17, 5  ;;  %v243_v25 = vperm.slane %v1733_v17, 0  ;;  %v229_v33 = vrot.slane %v1733_v17, 1 }
  0x8a   :  { %v234_v35 = vrot.slane %v1733_v17, 6  ;;  %v230_v45 = vrot.slane %v1733_v17, 2  ;;  %v231_v59 = vrot.slane %v1733_v17, 3  ;;  %v235_v61 = vrot.slane %v1733_v17, 7 }
  0x8b   :  { %v247_v19 = vperm.slane %v232_v18, 0  ;;  %v248_v26 = vperm.slane %v233_v23, 0  ;;  %v244_v36 = vperm.slane %v229_v33, 0 }
  0x8c   :  { %v249_v42 = vperm.slane %v234_v35, 0  ;;  %v245_v51 = vperm.slane %v230_v45, 0  ;;  %v246_v1 = vperm.slane %v231_v59, 0  ;;  %v250_v6 = vperm.slane %v235_v61, 0 }
  0x8e   :  { %v86_v20 = vpop.f32.mrf.mxu0 }
  0x8f   :  { %v197_v21 = vpop.f32.mrf.mxu1  ;;  %v1747_v37 = vadd.f32 %v1518_v15, %v86_v20 }
  0x90   :  { %v279_v22 = vadd.f32 %v247_v19, %v197_v21 }
  0x91   :  { %v239_v46 = vrot.slane %v1747_v37, 4  ;;  %v251_v2 = vperm.slane %v1747_v37, 0  ;;  %v236_v12 = vrot.slane %v1747_v37, 1  ;;  %v242_v16 = vrot.slane %v1747_v37, 7 }
  0x92   :  { %1520 = vtanh.f32 %v279_v22 }
  0x93   :  { %v255_v52 = vperm.slane %v239_v46, 0  ;;  %v252_v17 = vperm.slane %v236_v12, 0  ;;  %v238_v46 = vrot.slane %v1747_v37, 3 }
  0x96   :  { %v187_v27 = vpop.f32.mrf.mxu0  ;;  %v217_v55 = vpop.f32.mrf.mxu2 }
  0x97   :  { %v199_v28 = vpop.f32.mrf.mxu1  ;;  %v275_v30 = vadd.f32 %v243_v25, %v187_v27  ;;  %v287_v60 = vadd.f32 %v255_v52, %v217_v55  ;;  %v1759_v0 = vpop.f32.mrf.mxu3  ;;  %v258_v25 = vperm.slane %v242_v16, 0 }
  0x98   :  { %v1521_v29 = vpop.eup %1520  ;;  %v280_v31 = vadd.f32 %v248_v26, %v199_v28  ;;  %v237_v28 = vrot.slane %v1747_v37, 2 }
  0x99   :  { %v312_v32 = vmul.f32 %v1521_v29, %v1740_v24  ;;  %1522 = vtanh.f32 %v275_v30 }
  0x9a   :  { %1524 = vtanh.f32 %v280_v31  ;;  %v253_v35 = vperm.slane %v237_v28, 0 }
  0x9b   :  { %v336_v34 = vsel %vm71_vm0, %v312_v32, 0.0  ;;  %v240_v32 = vrot.slane %v1747_v37, 5 }
  0x9c   :  { %337 = vadd.xlane.f32.xlu2 %v336_v34 }
  0x9e   :  { %v189_v38 = vpop.f32.mrf.mxu0 }
  0x9f   :  { %v202_v39 = vpop.f32.mrf.mxu1  ;;  %v276_v40 = vadd.f32 %v244_v36, %v189_v38  ;;  %v1523_v41 = vpop.eup %1522 }
  0xa0   :  { %v1525_v43 = vpop.eup %1524  ;;  %v308_v44 = vmul.f32 %v1523_v41, %v1740_v24  ;;  %v281_v47 = vadd.f32 %v249_v42, %v202_v39  ;;  %v224_v20 = vpop.f32.mrf.mxu3  ;;  %v256_v41 = vperm.slane %v240_v32, 0 }
  0xa1   :  { %1526 = vtanh.f32 %v276_v40  ;;  %v313_v48 = vmul.f32 %v1525_v43, %v1740_v24  ;;  %v290_v29 = vadd.f32 %v258_v25, %v224_v20  ;;  %v219_v36 = vpop.f32.mrf.mxu2 }
  0xa2   :  { %v324_v49 = vsel %vm71_vm0, %v308_v44, 0.0  ;;  %1528 = vtanh.f32 %v281_v47  ;;  %v241_v44 = vrot.slane %v1747_v37, 6  ;;  %v288_v45 = vadd.f32 %v256_v41, %v219_v36 }
  0xa3   :  { %v339_v50 = vsel %vm71_vm0, %v313_v48, 0.0  ;;  %325 = vadd.xlane.f32.xlu0 %v324_v49 }
  0xa4   :  { %340 = vadd.xlane.f32.xlu2 %v339_v50  ;;  %v257_v50 = vperm.slane %v241_v44, 0 }
  0xa6   :  { %v192_v53 = vpop.f32.mrf.mxu0 }
  0xa7   :  { %v204_v54 = vpop.f32.mrf.mxu1  ;;  %v277_v56 = vadd.f32 %v245_v51, %v192_v53  ;;  %v1527_v57 = vpop.eup %1526  ;;  %v254_v51 = vperm.slane %v238_v46, 0 }
  0xa8   :  { %v309_v58 = vmul.f32 %v1527_v57, %v1740_v24  ;;  %v1529_v63 = vpop.eup %1528  ;;  %v282_v11 = vadd.f32 %v250_v6, %v204_v54  ;;  %v289_v57 = vadd.f32 %v257_v50, %v1759_v0  ;;  %v388_v6 = vlaneseq }
  0xa9   :  { %1530 = vtanh.f32 %v277_v56  ;;  %v314_v9 = vmul.f32 %v1529_v63, %v1740_v24 }
  0xaa   :  { %v327_v62 = vsel %vm71_vm0, %v309_v58, 0.0  ;;  %1532 = vtanh.f32 %v287_v60 }
  0xab   :  { %328 = vadd.xlane.f32.xlu0 %v327_v62  ;;  %v342_v14 = vsel %vm71_vm0, %v314_v9, 0.0  ;;  %v1801_v9 = vand.u32 127, %v388_v6 }
  0xae   :  { %v194_v3 = vpop.f32.mrf.mxu0 }
  0xaf   :  { %v207_v4 = vpop.f32.mrf.mxu1  ;;  %v1531_v5 = vpop.eup %1530  ;;  %v278_v7 = vadd.f32 %v246_v1, %v194_v3 }
  0xb0   :  { %v283_v8 = vadd.f32 %v251_v2, %v207_v4  ;;  %v310_v10 = vmul.f32 %v1531_v5, %v1740_v24  ;;  %v1533_v15 = vpop.eup %1532 }
  0xb1   :  { %1534 = vtanh.f32 %v278_v7  ;;  %v320_v22 = vmul.f32 %v1533_v15, %v1740_v24 }
  0xb2   :  { %1536 = vtanh.f32 %v283_v8  ;;  %v330_v13 = vsel %vm71_vm0, %v310_v10, 0.0 }
  0xb3   :  { %331 = vadd.xlane.f32.xlu1 %v330_v13  ;;  %343 = vadd.xlane.f32.xlu0 %v342_v14  ;;  %1538 = vtanh.f32 %v282_v11  ;;  %v360_v34 = vsel %vm71_vm0, %v320_v22, 0.0 }
  0xb7   :  { %v209_v18 = vpop.f32.mrf.mxu1  ;;  %v1535_v19 = vpop.eup %1534 }
  0xb8   :  { %v284_v21 = vadd.f32 %v252_v17, %v209_v18  ;;  %v1537_v23 = vpop.eup %1536  ;;  %v311_v26 = vmul.f32 %v1535_v19, %v1740_v24 }
  0xb9   :  { %v316_v27 = vmul.f32 %v1537_v23, %v1740_v24  ;;  %v1539_v31 = vpop.eup %1538 }
  0xba   :  { %1540 = vtanh.f32 %v284_v21  ;;  %v333_v30 = vsel %vm71_vm0, %v311_v26, 0.0  ;;  %v315_v39 = vmul.f32 %v1539_v31, %v1740_v24 }
  0xbb   :  { %v348_v33 = vsel %vm71_vm0, %v316_v27, 0.0  ;;  %334 = vadd.xlane.f32.xlu1 %v333_v30  ;;  %361 = vadd.xlane.f32.xlu0 %v360_v34  ;;  %1542 = vtanh.f32 %v290_v29 }
  0xbc   :  { %349 = vadd.xlane.f32.xlu2 %v348_v33  ;;  %v345_v48 = vsel %vm71_vm0, %v315_v39, 0.0 }
  0xbf   :  { %v212_v38 = vpop.f32.mrf.mxu1 }
  0xc0   :  { %v1541_v40 = vpop.eup %1540  ;;  %v285_v42 = vadd.f32 %v253_v35, %v212_v38 }
  0xc1   :  { %v317_v43 = vmul.f32 %v1541_v40, %v1740_v24  ;;  %v1543_v49 = vpop.eup %1542 }
  0xc2   :  { %1544 = vtanh.f32 %v285_v42  ;;  %v323_v55 = vmul.f32 %v1543_v49, %v1740_v24 }
  0xc3   :  { %v351_v47 = vsel %vm71_vm0, %v317_v43, 0.0  ;;  %346 = vadd.xlane.f32.xlu1 %v345_v48  ;;  %1546 = vtanh.f32 %v288_v45 }
  0xc4   :  { %352 = vadd.xlane.f32.xlu0 %v351_v47  ;;  %v369_v59 = vsel %vm71_vm0, %v323_v55, 0.0  ;;  %v1642_v55 = vmov 0  }
  0xc5   :  { %1517 = vset.pattern.permute.xlu2 %v1642_v55  ;;  %1516 = vset.pattern.permute.xlu1 %v1642_v55 }
  0xc6   :  { %1515 = vset.pattern.permute.xlu0 %v1642_v55 }
  0xc7   :  { %v214_v52 = vpop.f32.mrf.mxu1 }
  0xc8   :  { %v1545_v53 = vpop.eup %1544  ;;  %v286_v54 = vadd.f32 %v254_v51, %v214_v52 }
  0xc9   :  { %v318_v56 = vmul.f32 %v1545_v53, %v1740_v24  ;;  %v1547_v58 = vpop.eup %1546 }
  0xca   :  { %1548 = vtanh.f32 %v286_v54  ;;  %v321_v60 = vmul.f32 %v1547_v58, %v1740_v24 }
  0xcb   :  { %v354_v37 = vsel %vm71_vm0, %v318_v56, 0.0  ;;  %1550 = vtanh.f32 %v289_v57 }
  0xcc   :  { %355 = vadd.xlane.f32.xlu1 %v354_v37  ;;  %370 = vadd.xlane.f32.xlu0 %v369_v59  ;;  %v363_v1 = vsel %vm71_vm0, %v321_v60, 0.0 }
  0xd0   :  { %v1549_v61 = vpop.eup %1548 }
  0xd1   :  { %v319_v62 = vmul.f32 %v1549_v61, %v1740_v24  ;;  %v1551_v2 = vpop.eup %1550 }
  0xd2   :  { %v322_v0 = vmul.f32 %v1551_v2, %v1740_v24 }
  0xd3   :  { %v357_v63 = vsel %vm71_vm0, %v319_v62, 0.0 }
  0xd4   :  { %358 = vadd.xlane.f32.xlu2 %v357_v63  ;;  %364 = vadd.xlane.f32.xlu1 %v363_v1  ;;  %v366_v3 = vsel %vm71_vm0, %v322_v0, 0.0 }
  0xdc   :  { %367 = vadd.xlane.f32.xlu2 %v366_v3 }
 0x10f   :  { %v1797_v7 = vpop.xlane.xlu2 %337 }
 0x110   :  { %v394_v16 = vperm.slane %v1797_v7, %v1801_v9 }
 0x116   :  { %v1793_v4 = vpop.xlane.xlu0 %325 }
 0x117   :  { %v390_v11 = vperm.slane %v1793_v4, %v1801_v9  ;;  %v1818_v17 = vpop.xlane.xlu2 %340 }
 0x118   :  { %v395_v21 = vperm.slane %v1818_v17, %v1801_v9 }
 0x11e   :  { %v1795_v5 = vpop.xlane.xlu0 %328 }
 0x11f   :  { %v391_v10 = vperm.slane %v1795_v5, %v1801_v9 }
 0x121   :  { %v407_v14 = vsel %vm406_vm2, %v391_v10, %v390_v11 }
 0x126   :  { %v1799_v8 = vpop.xlane.xlu1 %331  ;;  %v1809_v12 = vpop.xlane.xlu0 %343 }
 0x127   :  { %v392_v24 = vperm.slane %v1799_v8, %v1801_v9  ;;  %v396_v23 = vperm.slane %v1809_v12, %v1801_v9 }
 0x129   :  { %v409_v18 = vsel %vm408_vm3, %v392_v24, %v407_v14 }
 0x12e   :  { %v1811_v13 = vpop.xlane.xlu1 %334  ;;  %v1828_v26 = vpop.xlane.xlu0 %361 }
 0x12f   :  { %v393_v15 = vperm.slane %v1811_v13, %v1801_v9  ;;  %v1834_v31 = vpop.xlane.xlu2 %349  ;;  %v402_v43 = vperm.slane %v1828_v26, %v1801_v9 }
 0x130   :  { %v398_v36 = vperm.slane %v1834_v31, %v1801_v9 }
 0x131   :  { %v411_v19 = vsel %vm410_vm4, %v393_v15, %v409_v18 }
 0x132   :  { %v413_v20 = vsel %vm412_vm5, %v394_v16, %v411_v19 }
 0x133   :  { %v415_v22 = vsel %vm2356_vm6, %v395_v21, %v413_v20 }
 0x134   :  { %v417_v28 = vsel %vm2355_vm7, %v396_v23, %v415_v22 }
 0x136   :  { %v347_v25 = vpop.xlane.xlu1 %346 }
 0x137   :  { %v397_v27 = vperm.slane %v347_v25, %v1801_v9  ;;  %v1836_v32 = vpop.xlane.xlu0 %352 }
 0x138   :  { %v399_v34 = vperm.slane %v1836_v32, %v1801_v9 }
 0x139   :  { %v419_v29 = vsel %vm2354_vm8, %v397_v27, %v417_v28 }
 0x13a   :  { %v430_v30 = vsel %vm429_vm9, %v419_v29, -inf  ;;  %v420_v40 = vsel %vm406_vm2, %v399_v34, %v398_v36 }
 0x13b   :  { %431 = vmax.xlane.f32.xlu1 %v430_v30 }
 0x13f   :  { %v1838_v33 = vpop.xlane.xlu1 %355  ;;  %v1857_v45 = vpop.xlane.xlu0 %370 }
 0x140   :  { %v400_v35 = vperm.slane %v1838_v33, %v1801_v9  ;;  %v405_v50 = vperm.slane %v1857_v45, %v1801_v9 }
 0x142   :  { %v421_v41 = vsel %vm408_vm3, %v400_v35, %v420_v40 }
 0x147   :  { %v1846_v38 = vpop.xlane.xlu2 %358  ;;  %v1855_v44 = vpop.xlane.xlu1 %364 }
 0x148   :  { %v401_v39 = vperm.slane %v1846_v38, %v1801_v9  ;;  %v403_v47 = vperm.slane %v1855_v44, %v1801_v9 }
 0x14a   :  { %v422_v42 = vsel %vm410_vm4, %v401_v39, %v421_v41 }
 0x14b   :  { %v423_v46 = vsel %vm412_vm5, %v402_v43, %v422_v42 }
 0x14c   :  { %v424_v51 = vsel %vm2356_vm6, %v403_v47, %v423_v46 }
 0x14f   :  { %v1862_v48 = vpop.xlane.xlu2 %367 }
 0x150   :  { %v404_v49 = vperm.slane %v1862_v48, %v1801_v9 }
 0x152   :  { %v425_v52 = vsel %vm2355_vm7, %v404_v49, %v424_v51 }
 0x153   :  { %v426_v53 = vsel %vm2354_vm8, %v405_v50, %v425_v52 }
 0x154   :  { %v433_v54 = vsel %vm429_vm9, %v426_v53, -inf }
 0x155   :  { %434 = vmax.xlane.f32.xlu2 %v433_v54 }
 0x1ae   :  { %v432_v56 = vpop.xlane.xlu1 %431 }
 0x1af   :  { %v440_v57 = vperm.slane %v432_v56, 2  ;;  %v439_v37 = vperm.slane %v432_v56, 1  ;;  %v438_v58 = vperm.slane %v432_v56, 0  ;;  %v441_v62 = vperm.slane %v432_v56, 3 }
 0x1b0   :  { %v442_v63 = vperm.slane %v432_v56, 4  ;;  %v445_v1 = vperm.slane %v432_v56, 7 }
 0x1b1   :  { %v472_v59 = vsub.f32 %v1799_v8, %v440_v57  ;;  %v471_v60 = vsub.f32 %v1795_v5, %v439_v37  ;;  %v470_v61 = vsub.f32 %v1793_v4, %v438_v58  ;;  %v473_v6 = vsub.f32 %v1811_v13, %v441_v62 }
 0x1b2   :  { %v474_v10 = vsub.f32 %v1797_v7, %v442_v63  ;;  %v477_v24 = vsub.f32 %v347_v25, %v445_v1  ;;  %v443_v8 = vperm.slane %v432_v56, 5  ;;  %v444_v5 = vperm.slane %v432_v56, 6 }
 0x1b3   :  { %v490_v2 = vmul.f32 1.442695, %v472_v59  ;;  %v488_v0 = vmul.f32 1.442695, %v471_v60  ;;  %v486_v3 = vmul.f32 1.442695, %v470_v61 }
 0x1b4   :  { %v492_v11 = vmul.f32 1.442695, %v473_v6  ;;  %v494_v14 = vmul.f32 1.442695, %v474_v10  ;;  %v500_v4 = vmul.f32 1.442695, %v477_v24  ;;  %v475_v7 = vsub.f32 %v1818_v17, %v443_v8 }
 0x1b5   :  { %1552 = vpow2.f32 %v490_v2  ;;  %v476_v13 = vsub.f32 %v1809_v12, %v444_v5 }
 0x1b6   :  { %1554 = vpow2.f32 %v488_v0  ;;  %v496_v19 = vmul.f32 1.442695, %v475_v7 }
 0x1b7   :  { %1556 = vpow2.f32 %v486_v3  ;;  %v498_v20 = vmul.f32 1.442695, %v476_v13 }
 0x1b8   :  { %1558 = vpow2.f32 %v492_v11 }
 0x1b9   :  { %1560 = vpow2.f32 %v494_v14 }
 0x1ba   :  { %1562 = vpow2.f32 %v500_v4 }
 0x1bb   :  { %v1877_v15 = vpop.eup %1552  ;;  %1564 = vpow2.f32 %v496_v19 }
 0x1bc   :  { %v1879_v16 = vpop.eup %1554  ;;  %541 = vperm.xlu2 %1517, %v1877_v15   ;;  %1566 = vpow2.f32 %v498_v20 }
 0x1bd   :  { %v1882_v18 = vpop.eup %1556  ;;  %538 = vperm.xlu1 %1516, %v1879_v16  }
 0x1be   :  { %535 = vperm.xlu0 %1515, %v1882_v18   ;;  %v1888_v21 = vpop.eup %1558 }
 0x1bf   :  { %v1890_v22 = vpop.eup %1560 }
 0x1c0   :  { %v1893_v23 = vpop.eup %1562 }
 0x1c1   :  { %v1900_v35 = vpop.eup %1564 }
 0x1c2   :  { %v1902_v40 = vpop.eup %1566 }
 0x1c4   :  { %544 = vperm.xlu2 %1517, %v1888_v21  }
 0x1c5   :  { %547 = vperm.xlu1 %1516, %v1890_v22  }
 0x1c6   :  { %556 = vperm.xlu0 %1515, %v1893_v23  }
 0x1c8   :  { %v435_v17 = vpop.xlane.xlu2 %434 }
 0x1c9   :  { %v446_v25 = vperm.slane %v435_v17, 0  ;;  %v447_v12 = vperm.slane %v435_v17, 1  ;;  %v448_v27 = vperm.slane %v435_v17, 2  ;;  %v449_v34 = vperm.slane %v435_v17, 3 }
 0x1ca   :  { %v450_v36 = vperm.slane %v435_v17, 4  ;;  %v451_v39 = vperm.slane %v435_v17, 5  ;;  %v452_v47 = vperm.slane %v435_v17, 6  ;;  %v453_v50 = vperm.slane %v435_v17, 7 }
 0x1cb   :  { %v478_v28 = vsub.f32 %v1834_v31, %v446_v25  ;;  %v479_v29 = vsub.f32 %v1836_v32, %v447_v12  ;;  %v480_v30 = vsub.f32 %v1838_v33, %v448_v27  ;;  %v481_v31 = vsub.f32 %v1846_v38, %v449_v34 }
 0x1cc   :  { %550 = vperm.xlu2 %1517, %v1900_v35   ;;  %v482_v32 = vsub.f32 %v1828_v26, %v450_v36  ;;  %v483_v33 = vsub.f32 %v1855_v44, %v451_v39  ;;  %v484_v26 = vsub.f32 %v1862_v48, %v452_v47  ;;  %v485_v38 = vsub.f32 %v1857_v45, %v453_v50 }
 0x1cd   :  { %v502_v41 = vmul.f32 1.442695, %v478_v28  ;;  %v504_v42 = vmul.f32 1.442695, %v479_v29  ;;  %v506_v43 = vmul.f32 1.442695, %v480_v30  ;;  %553 = vperm.xlu1 %1516, %v1902_v40  }
 0x1ce   :  { %v508_v46 = vmul.f32 1.442695, %v481_v31  ;;  %v510_v49 = vmul.f32 1.442695, %v482_v32  ;;  %v512_v52 = vmul.f32 1.442695, %v483_v33 }
 0x1cf   :  { %1568 = vpow2.f32 %v502_v41  ;;  %v514_v44 = vmul.f32 1.442695, %v484_v26  ;;  %v516_v55 = vmul.f32 1.442695, %v485_v38 }
 0x1d0   :  { %1570 = vpow2.f32 %v504_v42 }
 0x1d1   :  { %1572 = vpow2.f32 %v506_v43 }
 0x1d2   :  { %1574 = vpow2.f32 %v508_v46 }
 0x1d3   :  { %1576 = vpow2.f32 %v510_v49 }
 0x1d4   :  { %1578 = vpow2.f32 %v512_v52 }
 0x1d5   :  { %v1909_v51 = vpop.eup %1568  ;;  %1580 = vpow2.f32 %v514_v44 }
 0x1d6   :  { %v1911_v53 = vpop.eup %1570  ;;  %559 = vperm.xlu2 %1517, %v1909_v51   ;;  %1582 = vpow2.f32 %v516_v55 }
 0x1d7   :  { %v1914_v54 = vpop.eup %1572  ;;  %562 = vperm.xlu1 %1516, %v1911_v53  }
 0x1d8   :  { %565 = vperm.xlu0 %1515, %v1914_v54   ;;  %v1920_v56 = vpop.eup %1574 }
 0x1d9   :  { %v1922_v57 = vpop.eup %1576 }
 0x1da   :  { %v1925_v37 = vpop.eup %1578 }
 0x1db   :  { %v1929_v48 = vpop.eup %1580 }
 0x1dc   :  { %v1931_v45 = vpop.eup %1582 }
 0x1de   :  { %568 = vperm.xlu2 %1517, %v1920_v56  }
 0x1df   :  { %571 = vperm.xlu1 %1516, %v1922_v57  }
 0x1e0   :  { %574 = vperm.xlu0 %1515, %v1925_v37  }
 0x1e6   :  { %577 = vperm.xlu2 %1517, %v1929_v48  }
 0x1e7   :  { %580 = vperm.xlu1 %1516, %v1931_v45  }
 0x216   :  { %v542_v58 = vpop.permute.xlu2 %541 }
 0x217   :  { %v584_v3 = vperm.slane %v542_v58, %v1801_v9 }
 0x21e   :  { %v545_v59 = vpop.permute.xlu2 %544 }
 0x21f   :  { %v585_v24 = vperm.slane %v545_v59, %v1801_v9 }
 0x226   :  { %v551_v1 = vpop.permute.xlu2 %550 }
 0x227   :  { %v587_v5 = vperm.slane %v551_v1, %v1801_v9 }
 0x22f   :  { %v539_v60 = vpop.permute.xlu1 %538 }
 0x230   :  { %v536_v61 = vpop.permute.xlu0 %535  ;;  %v583_v62 = vperm.slane %v539_v60, %v1801_v9  ;;  %v560_v13 = vpop.permute.xlu2 %559 }
 0x231   :  { %v582_v63 = vperm.slane %v536_v61, %v1801_v9  ;;  %v590_v30 = vperm.slane %v560_v13, %v1801_v9 }
 0x233   :  { %v598_v2 = vsel %vm406_vm2, %v583_v62, %v582_v63 }
 0x234   :  { %v599_v6 = vsel %vm408_vm3, %v584_v3, %v598_v2 }
 0x235   :  { %v600_v11 = vsel %vm410_vm4, %v585_v24, %v599_v6 }
 0x237   :  { %v548_v0 = vpop.permute.xlu1 %547 }
 0x238   :  { %v586_v10 = vperm.slane %v548_v0, %v1801_v9  ;;  %v557_v14 = vpop.permute.xlu0 %556  ;;  %v569_v34 = vpop.permute.xlu2 %568 }
 0x239   :  { %v589_v19 = vperm.slane %v557_v14, %v1801_v9  ;;  %v593_v43 = vperm.slane %v569_v34, %v1801_v9 }
 0x23a   :  { %v601_v8 = vsel %vm412_vm5, %v586_v10, %v600_v11 }
 0x23b   :  { %v602_v20 = vsel %vm2356_vm6, %v587_v5, %v601_v8 }
 0x23f   :  { %v554_v4 = vpop.permute.xlu1 %553 }
 0x240   :  { %v588_v7 = vperm.slane %v554_v4, %v1801_v9  ;;  %v578_v49 = vpop.permute.xlu2 %577 }
 0x241   :  { %v596_v52 = vperm.slane %v578_v49, %v1801_v9 }
 0x242   :  { %v603_v17 = vsel %vm2355_vm7, %v588_v7, %v602_v20 }
 0x243   :  { %v604_v25 = vsel %vm2354_vm8, %v589_v19, %v603_v17 }
 0x244   :  { %v614_v12 = vsel %vm429_vm9, %v604_v25, 0.0 }
 0x245   :  { %615 = vadd.xlane.f32.xlu0 %v614_v12 }
 0x249   :  { %v563_v27 = vpop.permute.xlu1 %562 }
 0x24a   :  { %v591_v28 = vperm.slane %v563_v27, %v1801_v9  ;;  %v566_v29 = vpop.permute.xlu0 %565 }
 0x24b   :  { %v592_v36 = vperm.slane %v566_v29, %v1801_v9 }
 0x24c   :  { %v605_v39 = vsel %vm406_vm2, %v591_v28, %v590_v30 }
 0x24d   :  { %v606_v41 = vsel %vm408_vm3, %v592_v36, %v605_v39 }
 0x24e   :  { %v607_v33 = vsel %vm410_vm4, %v593_v43, %v606_v41 }
 0x251   :  { %v572_v42 = vpop.permute.xlu1 %571 }
 0x252   :  { %v594_v31 = vperm.slane %v572_v42, %v1801_v9  ;;  %v575_v32 = vpop.permute.xlu0 %574 }
 0x253   :  { %v595_v46 = vperm.slane %v575_v32, %v1801_v9 }
 0x254   :  { %v608_v47 = vsel %vm412_vm5, %v594_v31, %v607_v33 }
 0x255   :  { %v609_v50 = vsel %vm2356_vm6, %v595_v46, %v608_v47 }
 0x256   :  { %v610_v44 = vsel %vm2355_vm7, %v596_v52, %v609_v50 }
 0x259   :  { %v581_v26 = vpop.permute.xlu1 %580 }
 0x25a   :  { %v597_v38 = vperm.slane %v581_v26, %v1801_v9 }
 0x25c   :  { %v611_v55 = vsel %vm2354_vm8, %v597_v38, %v610_v44 }
 0x25d   :  { %v617_v58 = vsel %vm429_vm9, %v611_v55, 0.0 }
 0x25e   :  { %618 = vadd.xlane.f32.xlu2 %v617_v58 }
 0x2b8   :  { %v616_v59 = vpop.xlane.xlu0 %615 }
 0x2b9   :  { %v622_v60 = vperm.slane %v616_v59, 0  ;;  %v1967_v61 = vperm.slane %v616_v59, 1  ;;  %v1969_v62 = vperm.slane %v616_v59, 2  ;;  %v1971_v63 = vperm.slane %v616_v59, 3 }
 0x2ba   :  { %v1974_v1 = vperm.slane %v616_v59, 6  ;;  %v1977_v2 = vperm.slane %v616_v59, 7  ;;  %v1986_v24 = vperm.slane %v616_v59, 4  ;;  %v1991_v14 = vperm.slane %v616_v59, 5 }
 0x2bb   :  { %1584 = vrcp.f32 %v622_v60  ;;  %v663_v4 = vand.u32 2147483647, %v622_v60  ;;  %vm659_vm10 = vweird.f32 %v622_v60  ;;  %v665_v19 = vand.u32 2147483648, %v622_v60 }
 0x2bc   :  { %1586 = vrcp.f32 %v1967_v61  ;;  %v770_v11 = vand.u32 2147483648, %v1977_v2  ;;  %v768_v13 = vand.u32 2147483647, %v1977_v2  ;;  %vm749_vm11 = vweird.f32 %v1974_v1 }
 0x2bd   :  { %1588 = vrcp.f32 %v1969_v62  ;;  %v753_v25 = vand.u32 2147483647, %v1974_v1  ;;  %vm764_vm13 = vweird.f32 %v1977_v2  ;;  %v755_v29 = vand.u32 2147483648, %v1974_v1 }
 0x2be   :  { %1590 = vrcp.f32 %v1971_v63  ;;  %v771_v28 = vor.u32 1.1754944e-38, %v770_v11  ;;  %vm664_vm14 = vcmp.eq.f32.partialorder %v663_v4, 8.507059e+37  ;;  %vm2006_vm15 = vcmp.eq.f32.partialorder %v768_v13, 8.507059e+37 }
 0x2bf   :  { %1592 = vrcp.f32 %v1974_v1  ;;  %v666_v31 = vor.u32 1.1754944e-38, %v665_v19  ;;  %vm674_vm1 = vweird.f32 %v1967_v61  ;;  %v680_v52 = vand.u32 2147483648, %v1967_v61 }
 0x2c0   :  { %1594 = vrcp.f32 %v1977_v2  ;;  %v678_v55 = vand.u32 2147483647, %v1967_v61  ;;  %vm2020_vm7 = vcmp.eq.f32.partialorder %v753_v25, 8.507059e+37  ;;  %vm689_vm6 = vweird.f32 %v1969_v62 }
 0x2c1   :  { %v1585_v0 = vpop.eup %1584  ;;  %1596 = vrcp.f32 %v1986_v24 }
 0x2c2   :  { %v1981_v3 = vpop.eup %1586  ;;  %v655_v6 = vmul.f32 %v1585_v0, %v622_v60  ;;  %vm660_vm12 = vweird.f32 %v1585_v0  ;;  %1598 = vrcp.f32 %v1991_v14 }
 0x2c3   :  { %v1984_v10 = vpop.eup %1588  ;;  %v670_v8 = vmul.f32 %v1981_v3, %v1967_v61  ;;  %vm661_vm0 = vmor %vm659_vm10, %vm660_vm12  ;;  %vm675_vm8 = vweird.f32 %v1981_v3  ;;  %v681_v61 = vor.u32 1.1754944e-38, %v680_v52 }
 0x2c4   :  { %v656_v5 = vsub.f32 1.0, %v655_v6  ;;  %v685_v7 = vmul.f32 %v1984_v10, %v1969_v62  ;;  %v1996_v17 = vpop.eup %1590 }
 0x2c5   :  { %v671_v20 = vsub.f32 1.0, %v670_v8  ;;  %v1593_v27 = vpop.eup %1592  ;;  %v700_v32 = vmul.f32 %v1996_v17, %v1971_v63  ;;  %v756_v8 = vor.u32 1.1754944e-38, %v755_v29 }
 0x2c6   :  { %v657_v12 = vmul.f32 %v1585_v0, %v656_v5  ;;  %v686_v34 = vsub.f32 1.0, %v685_v7  ;;  %v1595_v36 = vpop.eup %1594  ;;  %v745_v39 = vmul.f32 %v1593_v27, %v1974_v1  ;;  %vm750_vm10 = vweird.f32 %v1593_v27 }
 0x2c7   :  { %v672_v30 = vmul.f32 %v1981_v3, %v671_v20  ;;  %v760_v42 = vmul.f32 %v1595_v36, %v1977_v2  ;;  %vm765_vm12 = vweird.f32 %v1595_v36  ;;  %v2030_v6 = vpop.eup %1596  ;;  %v695_v5 = vand.u32 2147483648, %v1969_v62 }
 0x2c8   :  { %v658_v41 = vadd.f32 %v1585_v0, %v657_v12  ;;  %v746_v33 = vsub.f32 1.0, %v745_v39  ;;  %v687_v26 = vmul.f32 %v1984_v10, %v686_v34  ;;  %v708_v39 = vand.u32 2147483647, %v1971_v63 }
 0x2c9   :  { %v673_v47 = vadd.f32 %v1981_v3, %v672_v30  ;;  %v761_v49 = vsub.f32 1.0, %v760_v42 }
 0x2ca   :  { %v662_v46 = vsel %vm661_vm0, %v1585_v0, %v658_v41  ;;  %v747_v38 = vmul.f32 %v1593_v27, %v746_v33  ;;  %vm2026_vm0 = vmor %vm674_vm1, %vm675_vm8  ;;  %v701_v0 = vsub.f32 1.0, %v700_v32  ;;  %v688_v7 = vadd.f32 %v1984_v10, %v687_v26 }
 0x2cb   :  { %v667_v50 = vsel %vm664_vm14, %v666_v31, %v662_v46  ;;  %v762_v58 = vmul.f32 %v1595_v36, %v761_v49  ;;  %vm751_vm8 = vmor %vm749_vm11, %vm750_vm10  ;;  %vm690_vm14 = vweird.f32 %v1984_v10  ;;  %v715_v41 = vmul.f32 %v2030_v6, %v1986_v24  ;;  %v2093_v46 = vpop.eup %1598 }
 0x2cc   :  { %v668_v44 = vmul.f32 %v1882_v18, %v667_v50  ;;  %v748_v11 = vadd.f32 %v1593_v27, %v747_v38  ;;  %v677_v18 = vsel %vm2026_vm0, %v1981_v3, %v673_v47  ;;  %vm766_vm1 = vmor %vm764_vm13, %vm765_vm12  ;;  %vm679_vm0 = vcmp.eq.f32.partialorder %v678_v55, 8.507059e+37 }
 0x2cd   :  { %v763_v4 = vadd.f32 %v1595_v36, %v762_v58  ;;  %v693_v3 = vand.u32 2147483647, %v1969_v62  ;;  %v682_v25 = vsel %vm679_vm0, %v681_v61, %v677_v18  ;;  %v702_v12 = vmul.f32 %v1996_v17, %v701_v0  ;;  %vm2057_vm11 = vmor %vm689_vm6, %vm690_vm14 }
 0x2ce   :  { %911 = vperm.xlu1 %1516, %v668_v44   ;;  %v752_v13 = vsel %vm751_vm8, %v1593_v27, %v748_v11  ;;  %v692_v34 = vsel %vm2057_vm11, %v1984_v10, %v688_v7  ;;  %vm704_vm13 = vweird.f32 %v1971_v63  ;;  %vm2089_vm10 = vcmp.eq.f32.partialorder %v708_v39, 8.507059e+37 }
 0x2cf   :  { %v767_v20 = vsel %vm766_vm1, %v1595_v36, %v763_v4  ;;  %v757_v1 = vsel %vm2020_vm7, %v756_v8, %v752_v13  ;;  %v696_v36 = vor.u32 1.1754944e-38, %v695_v5  ;;  %vm694_vm6 = vcmp.eq.f32.partialorder %v693_v3, 8.507059e+37 }
 0x2d0   :  { %v772_v29 = vsel %vm2006_vm15, %v771_v28, %v767_v20  ;;  %v758_v2 = vmul.f32 %v1902_v40, %v757_v1  ;;  %v683_v40 = vmul.f32 %v1879_v16, %v682_v25  ;;  %vm705_vm7 = vweird.f32 %v1996_v17 }
 0x2d1   :  { %v2044_v19 = vpop.xlane.xlu2 %618  ;;  %v773_v62 = vmul.f32 %v1893_v23, %v772_v29  ;;  %v703_v23 = vadd.f32 %v1996_v17, %v702_v12  ;;  %v697_v10 = vsel %vm694_vm6, %v696_v36, %v692_v34  ;;  %v710_v16 = vand.u32 2147483648, %v1971_v63  ;;  %vm2085_vm15 = vmor %vm704_vm13, %vm705_vm7 }
 0x2d2   :  { %v2055_v27 = vperm.slane %v2044_v19, 2  ;;  %929 = vperm.xlu2 %1517, %v758_v2   ;;  %v2067_v28 = vperm.slane %v2044_v19, 4  ;;  %v2074_v42 = vperm.slane %v2044_v19, 5  ;;  %v2081_v43 = vperm.slane %v2044_v19, 7 }
 0x2d3   :  { %932 = vperm.xlu0 %1515, %v773_v62   ;;  %v716_v33 = vsub.f32 1.0, %v715_v41  ;;  %v2096_v47 = vperm.slane %v2044_v19, 0  ;;  %v698_v63 = vmul.f32 %v1877_v15, %v697_v10  ;;  %v707_v49 = vsel %vm2085_vm15, %v1996_v17, %v703_v23 }
 0x2d4   :  { %1600 = vrcp.f32 %v2055_v27  ;;  %v2104_v50 = vperm.slane %v2044_v19, 1  ;;  %v813_v52 = vand.u32 2147483647, %v2055_v27  ;;  %v711_v26 = vor.u32 1.1754944e-38, %v710_v16 }
 0x2d5   :  { %1602 = vrcp.f32 %v2067_v28  ;;  %vm719_vm12 = vweird.f32 %v1986_v24  ;;  %vm720_vm8 = vweird.f32 %v2030_v6  ;;  %v815_v38 = vand.u32 2147483648, %v2055_v27 }
 0x2d6   :  { %914 = vperm.xlu1 %1516, %v683_v40   ;;  %1604 = vrcp.f32 %v2074_v42  ;;  %v723_v15 = vand.u32 2147483647, %v1986_v24  ;;  %v725_v44 = vand.u32 2147483648, %v1986_v24  ;;  %v843_v17 = vand.u32 2147483647, %v2067_v28  ;;  %vm2156_vm15 = vmor %vm719_vm12, %vm720_vm8 }
 0x2d7   :  { %1606 = vrcp.f32 %v2081_v43  ;;  %v712_v58 = vsel %vm2089_vm10, %v711_v26, %v707_v49  ;;  %v717_v59 = vmul.f32 %v2030_v6, %v716_v33  ;;  %v730_v60 = vmul.f32 %v2093_v46, %v1991_v14 }
 0x2d8   :  { %v2120_v0 = vperm.slane %v2044_v19, 3  ;;  %1608 = vrcp.f32 %v2096_v47  ;;  %vm809_vm14 = vweird.f32 %v2055_v27  ;;  %vm2126_vm1 = vcmp.eq.f32.partialorder %v813_v52, 8.507059e+37 }
 0x2d9   :  { %1610 = vrcp.f32 %v2104_v50  ;;  %vm839_vm0 = vweird.f32 %v2067_v28  ;;  %v845_v5 = vand.u32 2147483648, %v2067_v28  ;;  %v816_v7 = vor.u32 1.1754944e-38, %v815_v38 }
 0x2da   :  { %v1601_v55 = vpop.eup %1600  ;;  %v713_v3 = vmul.f32 %v1888_v21, %v712_v58  ;;  %vm2136_vm11 = vcmp.eq.f32.partialorder %v843_v17, 8.507059e+37  ;;  %vm854_vm6 = vweird.f32 %v2074_v42  ;;  %v718_v25 = vadd.f32 %v2030_v6, %v717_v59 }
 0x2db   :  { %v805_v11 = vmul.f32 %v1601_v55, %v2055_v27  ;;  %v1603_v8 = vpop.eup %1602  ;;  %vm810_vm7 = vweird.f32 %v1601_v55  ;;  %v731_v30 = vsub.f32 1.0, %v730_v60  ;;  %v846_v62 = vor.u32 1.1754944e-38, %v845_v5 }
 0x2dc   :  { %v2132_v4 = vpop.eup %1604  ;;  %v835_v13 = vmul.f32 %v1603_v8, %v2067_v28  ;;  %v858_v21 = vand.u32 2147483647, %v2074_v42  ;;  %vm840_vm13 = vweird.f32 %v1603_v8  ;;  %v860_v23 = vand.u32 2147483648, %v2074_v42  ;;  %vm811_vm10 = vmor %vm809_vm14, %vm810_vm7 }
 0x2dd   :  { %v806_v61 = vsub.f32 1.0, %v805_v11  ;;  %v850_v1 = vmul.f32 %v2132_v4, %v2074_v42  ;;  %v2144_v12 = vpop.eup %1606  ;;  %v890_v33 = vand.u32 2147483648, %v2081_v43  ;;  %vm855_vm12 = vweird.f32 %v2132_v4  ;;  %vm841_vm8 = vmor %vm839_vm0, %vm840_vm13 }
 0x2de   :  { %917 = vperm.xlu1 %1516, %v698_v63   ;;  %v836_v2 = vsub.f32 1.0, %v835_v13  ;;  %v880_v36 = vmul.f32 %v2144_v12, %v2081_v43  ;;  %v2149_v40 = vpop.eup %1608  ;;  %v722_v63 = vsel %vm2156_vm15, %v2030_v6, %v718_v25  ;;  %v732_v26 = vmul.f32 %v2093_v46, %v731_v30 }
 0x2df   :  { %v807_v29 = vmul.f32 %v1601_v55, %v806_v61  ;;  %v851_v34 = vsub.f32 1.0, %v850_v1  ;;  %v2160_v16 = vpop.eup %1610  ;;  %v775_v6 = vmul.f32 %v2149_v40, %v2096_v47  ;;  %vm885_vm14 = vweird.f32 %v2144_v12 }
 0x2e0   :  { %v837_v41 = vmul.f32 %v1603_v8, %v836_v2  ;;  %v881_v32 = vsub.f32 1.0, %v880_v36  ;;  %v726_v59 = vor.u32 1.1754944e-38, %v725_v44  ;;  %vm884_vm0 = vweird.f32 %v2081_v43 }
 0x2e1   :  { %v808_v39 = vadd.f32 %v1601_v55, %v807_v29  ;;  %v852_v31 = vmul.f32 %v2132_v4, %v851_v34  ;;  %vm724_vm7 = vcmp.eq.f32.partialorder %v723_v15, 8.507059e+37  ;;  %v888_v42 = vand.u32 2147483647, %v2081_v43 }
 0x2e2   :  { %v838_v52 = vadd.f32 %v1603_v8, %v837_v41  ;;  %v882_v17 = vmul.f32 %v2144_v12, %v881_v32  ;;  %v861_v18 = vor.u32 1.1754944e-38, %v860_v23  ;;  %v733_v61 = vadd.f32 %v2093_v46, %v732_v26 }
 0x2e3   :  { %v812_v49 = vsel %vm811_vm10, %v1601_v55, %v808_v39  ;;  %v853_v27 = vadd.f32 %v2132_v4, %v852_v31  ;;  %v776_v24 = vsub.f32 1.0, %v775_v6  ;;  %vm859_vm13 = vcmp.eq.f32.partialorder %v858_v21, 8.507059e+37 }
 0x2e4   :  { %v817_v38 = vsel %vm2126_vm1, %v816_v7, %v812_v49  ;;  %v842_v58 = vsel %vm841_vm8, %v1603_v8, %v838_v52  ;;  %vm2185_vm1 = vmor %vm854_vm6, %vm855_vm12  ;;  %v883_v11 = vadd.f32 %v2144_v12, %v882_v17  ;;  %v727_v8 = vsel %vm724_vm7, %v726_v59, %v722_v63 }
 0x2e5   :  { %v818_v55 = vmul.f32 %v1914_v54, %v817_v38  ;;  %v847_v60 = vsel %vm2136_vm11, %v846_v62, %v842_v58  ;;  %v857_v44 = vsel %vm2185_vm1, %v2132_v4, %v853_v27  ;;  %vm2198_vm11 = vmor %vm884_vm0, %vm885_vm14  ;;  %vm735_vm6 = vweird.f32 %v2093_v46 }
 0x2e6   :  { %920 = vperm.xlu1 %1516, %v713_v3   ;;  %v848_v54 = vmul.f32 %v1922_v57, %v847_v60  ;;  %v887_v57 = vsel %vm2198_vm11, %v2144_v12, %v883_v11  ;;  %v891_v15 = vor.u32 1.1754944e-38, %v890_v33  ;;  %v740_v43 = vand.u32 2147483648, %v1991_v14  ;;  %v27_v11 = vld [vmem:[%s2348_s0 + $0x18] sm:$0xff]  }
 0x2e7   :  { %941 = vperm.xlu0 %1515, %v818_v55   ;;  %v862_v4 = vsel %vm859_vm13, %v861_v18, %v857_v44  ;;  %v728_v7 = vmul.f32 %v1890_v22, %v727_v8  ;;  %vm734_vm15 = vweird.f32 %v1991_v14  ;;  %v738_v13 = vand.u32 2147483647, %v1991_v14 }
 0x2e8   :  { %947 = vperm.xlu2 %1517, %v848_v54   ;;  %1612 = vrcp.f32 %v2120_v0  ;;  %vm889_vm10 = vcmp.eq.f32.partialorder %v888_v42, 8.507059e+37  ;;  %vm736_vm12 = vmor %vm734_vm15, %vm735_vm6  ;;  %v777_v1 = vmul.f32 %v2149_v40, %v776_v24  ;;  %v790_v25 = vmul.f32 %v2160_v16, %v2104_v50  ;;  %v23_v24 = vld [vmem:[%s2348_s0 + $0x8] sm:$0xff]  }
 0x2e9   :  { %v892_v3 = vsel %vm889_vm10, %v891_v15, %v887_v57  ;;  %v737_v20 = vsel %vm736_vm12, %v2093_v46, %v733_v61  ;;  %v863_v12 = vmul.f32 %v1925_v37, %v862_v4  ;;  %v741_v22 = vor.u32 1.1754944e-38, %v740_v43  ;;  %v25_v4 = vld [vmem:[%s2348_s0 + $0x10] sm:$0xff]  }
 0x2ea   :  { %vm739_vm8 = vcmp.eq.f32.partialorder %v738_v13, 8.507059e+37  ;;  %v2218_v29 = vperm.slane %v2044_v19, 6  ;;  %v893_v14 = vmul.f32 %v1931_v45, %v892_v3  ;;  %v778_v30 = vadd.f32 %v2149_v40, %v777_v1 }
 0x2eb   :  { %v742_v2 = vsel %vm739_vm8, %v741_v22, %v737_v20  ;;  %vm780_vm14 = vweird.f32 %v2149_v40  ;;  %v791_v46 = vsub.f32 1.0, %v790_v25  ;;  %v785_v34 = vand.u32 2147483648, %v2096_v47  ;;  %v29_v22 = vld [vmem:[%s2348_s0 + $0x20] sm:$0xff]  }
 0x2ec   :  { %v743_v37 = vmul.f32 %v1900_v35, %v742_v2  ;;  %vm779_vm1 = vweird.f32 %v2096_v47  ;;  %v783_v19 = vand.u32 2147483647, %v2096_v47  ;;  %1614 = vrcp.f32 %v2218_v29 }
 0x2ed   :  { %vm781_vm0 = vmor %vm779_vm1, %vm780_vm14  ;;  %v792_v21 = vmul.f32 %v2160_v16, %v791_v46  ;;  %v786_v39 = vor.u32 1.1754944e-38, %v785_v34  ;;  %vm795_vm11 = vweird.f32 %v2160_v16  ;;  %v800_v47 = vand.u32 2147483648, %v2104_v50  ;;  %v31_v46 = vld [vmem:[%s2348_s0 + $0x28] sm:$0xff]  }
 0x2ee   :  { %923 = vperm.xlu1 %1516, %v728_v7   ;;  %v1613_v62 = vpop.eup %1612  ;;  %v782_v45 = vsel %vm781_vm0, %v2149_v40, %v778_v30  ;;  %vm784_vm7 = vcmp.eq.f32.partialorder %v783_v19, 8.507059e+37  ;;  %vm794_vm6 = vweird.f32 %v2104_v50  ;;  %v798_v40 = vand.u32 2147483647, %v2104_v50 }
 0x2ef   :  { %950 = vperm.xlu0 %1515, %v863_v12   ;;  %v820_v36 = vmul.f32 %v1613_v62, %v2120_v0  ;;  %v787_v41 = vsel %vm784_vm7, %v786_v39, %v782_v45  ;;  %v793_v23 = vadd.f32 %v2160_v16, %v792_v21  ;;  %vm796_vm13 = vmor %vm794_vm6, %vm795_vm11  ;;  %v801_v49 = vor.u32 1.1754944e-38, %v800_v47  ;;  %v33_v45 = vld [vmem:[%s2348_s0 + $0x30] sm:$0xf]  ;;  %v34_v21 = vld [vmem:[%s2348_s0 + $0x34] sm:$0xff]  }
 0x2f0   :  { %956 = vperm.xlu2 %1517, %v893_v14   ;;  %v788_v31 = vmul.f32 %v1909_v51, %v787_v41  ;;  %vm799_vm15 = vcmp.eq.f32.partialorder %v798_v40, 8.507059e+37  ;;  %vm825_vm10 = vweird.f32 %v1613_v62  ;;  %v830_v27 = vand.u32 2147483648, %v2120_v0 }
 0x2f1   :  { %v821_v35 = vsub.f32 1.0, %v820_v36  ;;  %v797_v32 = vsel %vm796_vm13, %v2160_v16, %v793_v23  ;;  %vm824_vm12 = vweird.f32 %v2120_v0  ;;  %v828_v50 = vand.u32 2147483647, %v2120_v0 }
 0x2f2   :  { %v1615_v10 = vpop.eup %1614  ;;  %v802_v52 = vsel %vm799_vm15, %v801_v49, %v797_v32  ;;  %vm826_vm8 = vmor %vm824_vm12, %vm825_vm10  ;;  %v831_v6 = vor.u32 1.1754944e-38, %v830_v27  ;;  %v875_v59 = vand.u32 2147483648, %v2218_v29  ;;  %vm869_vm0 = vweird.f32 %v2218_v29 }
 0x2f3   :  { %v822_v33 = vmul.f32 %v1613_v62, %v821_v35  ;;  %v865_v63 = vmul.f32 %v1615_v10, %v2218_v29  ;;  %v803_v51 = vmul.f32 %v1911_v53, %v802_v52  ;;  %vm829_vm14 = vcmp.eq.f32.partialorder %v828_v50, 8.507059e+37  ;;  %v36_v50 = vld [vmem:[%s2348_s0 + $0x3c] sm:$0xf] }
 0x2f4   :  { %vm870_vm1 = vweird.f32 %v1615_v10  ;;  %v873_v53 = vand.u32 2147483647, %v2218_v29  ;;  %v876_v28 = vor.u32 1.1754944e-38, %v875_v59  ;;  %v998_v54 = vunpack.c.l.bf16 %v27_v11 }
 0x2f5   :  { %v823_v26 = vadd.f32 %v1613_v62, %v822_v33  ;;  %v866_v38 = vsub.f32 1.0, %v865_v63  ;;  %vm871_vm7 = vmor %vm869_vm0, %vm870_vm1  ;;  %v994_v57 = vunpack.c.l.bf16 %v23_v24  ;;  %v996_v7 = vunpack.c.l.bf16 %v25_v4 }
 0x2f6   :  { %926 = vperm.xlu1 %1516, %v743_v37   ;;  %vm874_vm11 = vcmp.eq.f32.partialorder %v873_v53, 8.507059e+37  ;;  %1157 = vmatpush.msra.mxu0 %v998_v54  ;;  %v997_v20 = vunpack.c.h.bf16 %v25_v4  ;;  %v999_v25 = vunpack.c.h.bf16 %v27_v11  ;;  %v1000_v14 = vunpack.c.l.bf16 %v29_v22 }
 0x2f7   :  { %v827_v16 = vsel %vm826_vm8, %v1613_v62, %v823_v26  ;;  %v867_v17 = vmul.f32 %v1615_v10, %v866_v38  ;;  %v1001_v30 = vunpack.c.h.bf16 %v29_v22  ;;  %v1002_v34 = vunpack.c.l.bf16 %v31_v46 }
 0x2f8   :  { %v832_v55 = vsel %vm829_vm14, %v831_v6, %v827_v16  ;;  %v1004_v36 = vunpack.c.l.bf16 %v33_v45  ;;  %v1005_v35 = vunpack.c.l.bf16 %v34_v21  ;;  %vm2379_vm6 = vcmask 1045509  }
 0x2f9   :  { %v868_v58 = vadd.f32 %v1615_v10, %v867_v17  ;;  %v833_v60 = vmul.f32 %v1920_v56, %v832_v55  ;;  %v21_v56 = vld [vmem:[%s2348_s0] sm:$0xff]   ;;  %1223 = vmatpush.msrb.mxu0 %v1001_v30  ;;  %vm2380_vm13 = vcmask 1046534   ;;  %vm2381_vm15 = vcmask 1047559  }
 0x2fa   :  { %v992_v8 = vunpack.c.l.bf16 %v21_v56  ;;  %v993_v5 = vunpack.c.h.bf16 %v21_v56  ;;  %v1006_v38 = vunpack.c.h.bf16 %v34_v21  ;;  %v1007_v6 = vunpack.c.l.bf16 %v36_v50  ;;  %vm2383_vm10 = vmmov %vm2380_vm13 }
 0x2fb   :  { %v872_v0 = vsel %vm871_vm7, %v1615_v10, %v868_v58  ;;  %v1003_v10 = vunpack.c.h.bf16 %v31_v46 }
 0x2fc   :  { %v877_v44 = vsel %vm874_vm11, %v876_v28, %v872_v0  ;;  %1025 = vmatpush.msrb.mxu2 %v992_v8  ;;  %1047 = vmatpush.msrb.mxu3 %v993_v5 }
 0x2fd   :  { %v878_v42 = vmul.f32 %v1929_v48, %v877_v44  ;;  %v995_v48 = vunpack.c.h.bf16 %v23_v24 }
 0x2fe   :  { %935 = vperm.xlu1 %1516, %v788_v31   ;;  %1069 = vmatpush.msra.mxu2 %v994_v57 }
 0x2ff   :  { %1091 = vmatpush.msra.mxu3 %v995_v48 }
 0x306   :  { %938 = vperm.xlu1 %1516, %v803_v51  }
 0x30e   :  { %944 = vperm.xlu1 %1516, %v833_v60  }
 0x316   :  { %953 = vperm.xlu1 %1516, %v878_v42  }
 0x32c   :  { %v930_v18 = vpop.permute.xlu2 %929 }
 0x32d   :  { %v964_v61 = vperm.slane %v930_v18, %v1801_v9 }
 0x32f   :  { %1474 = vmatmul.msk.f32.vlgmr.msra.gmra.mxu0 %vm429_vm9, %v964_v61 }
 0x330   :  { %1289 = vmatpush.msra.mxu0 %v1004_v36 }
 0x340   :  { %v912_v15 = vpop.permute.xlu1 %911 }
 0x341   :  { %v958_v43 = vperm.slane %v912_v15, %v1801_v9 }
 0x342   :  { %v948_v59 = vpop.permute.xlu2 %947 }
 0x343   :  { %1468 = vmatmul.msk.f32.vlgmr.msrb.gmra.mxu2 %vm429_vm9, %v958_v43  ;;  %v970_v0 = vperm.slane %v948_v59, %v1801_v9 }
 0x344   :  { %1113 = vmatpush.msrb.mxu2 %v996_v7 }
 0x345   :  { %v933_v19 = vpop.permute.xlu0 %932 }
 0x346   :  { %v965_v47 = vperm.slane %v933_v19, %v1801_v9 }
 0x348   :  { %v915_v13 = vpop.permute.xlu1 %914 }
 0x349   :  { %v959_v3 = vperm.slane %v915_v13, %v1801_v9 }
 0x34a   :  { %v957_v44 = vpop.permute.xlu2 %956 }
 0x34b   :  { %1469 = vmatmul.msk.f32.vlgmr.msrb.gmra.mxu3 %vm429_vm9, %v959_v3  ;;  %v974_v39 = vsel %vm406_vm2, %v959_v3, %v958_v43  ;;  %v973_v8 = vperm.slane %v957_v44, %v1801_v9 }
 0x34c   :  { %1135 = vmatpush.msrb.mxu3 %v997_v20 }
 0x350   :  { %v918_v1 = vpop.permute.xlu1 %917 }
 0x351   :  { %v960_v12 = vperm.slane %v918_v1, %v1801_v9 }
 0x353   :  { %1470 = vmatmul.msk.f32.vlgmr.msra.gmra.mxu2 %vm429_vm9, %v960_v12  ;;  %v975_v41 = vsel %vm408_vm3, %v960_v12, %v974_v39 }
 0x354   :  { %1179 = vmatpush.msra.mxu2 %v999_v25 }
 0x358   :  { %v921_v29 = vpop.permute.xlu1 %920 }
 0x359   :  { %v961_v2 = vperm.slane %v921_v29, %v1801_v9  ;;  %v942_v63 = vpop.permute.xlu0 %941 }
 0x35a   :  { %v968_v27 = vperm.slane %v942_v63, %v1801_v9 }
 0x35b   :  { %1471 = vmatmul.msk.f32.vlgmr.msra.gmra.mxu3 %vm429_vm9, %v961_v2  ;;  %v976_v31 = vsel %vm410_vm4, %v961_v2, %v975_v41 }
 0x35c   :  { %1201 = vmatpush.msra.mxu3 %v1000_v14 }
 0x360   :  { %v924_v62 = vpop.permute.xlu1 %923 }
 0x361   :  { %v962_v37 = vperm.slane %v924_v62, %v1801_v9  ;;  %v951_v16 = vpop.permute.xlu0 %950 }
 0x362   :  { %v971_v55 = vperm.slane %v951_v16, %v1801_v9 }
 0x363   :  { %1472 = vmatmul.msk.f32.vlgmr.msrb.gmra.mxu2 %vm429_vm9, %v962_v37  ;;  %v977_v32 = vsel %vm412_vm5, %v962_v37, %v976_v31 }
 0x364   :  { %1245 = vmatpush.msrb.mxu2 %v1002_v34 }
 0x368   :  { %v927_v23 = vpop.permute.xlu1 %926 }
 0x369   :  { %v963_v40 = vperm.slane %v927_v23, %v1801_v9 }
 0x36b   :  { %v978_v33 = vsel %vm2379_vm6, %v963_v40, %v977_v32  ;;  %1473 = vmatmul.msk.f32.vlgmr.msrb.gmra.mxu3 %vm429_vm9, %v963_v40  ;;  %1475 = vmatmul.msk.f32.vlgmr.msra.gmra.mxu2 %vm429_vm9, %v965_v47 }
 0x36c   :  { %v979_v49 = vsel %vm2380_vm13, %v964_v61, %v978_v33  ;;  %1311 = vmatpush.msra.mxu2 %v1005_v35  ;;  %1267 = vmatpush.msrb.mxu3 %v1003_v10 }
 0x36d   :  { %v980_v52 = vsel %vm2381_vm15, %v965_v47, %v979_v49 }
 0x36e   :  { %990 = vst.msk [vmem:[%s2352_s4] sm:$0xff] %vm429_vm9, %v980_v52 }
 0x370   :  { %v936_v26 = vpop.permute.xlu1 %935 }
 0x371   :  { %v966_v51 = vperm.slane %v936_v26, %v1801_v9 }
 0x373   :  { %1476 = vmatmul.msk.f32.vlgmr.msra.gmra.mxu3 %vm429_vm9, %v966_v51  ;;  %1478 = vmatmul.msk.f32.vlgmr.msrb.gmra.mxu2 %vm429_vm9, %v968_v27 }
 0x374   :  { %1333 = vmatpush.msra.mxu3 %v1006_v38 }
 0x378   :  { %v939_v17 = vpop.permute.xlu1 %938 }
 0x379   :  { %v967_v58 = vperm.slane %v939_v17, %v1801_v9 }
 0x37b   :  { %1477 = vmatmul.msk.f32.vlgmr.msrb.gmra.mxu0 %vm429_vm9, %v967_v58  ;;  %1481 = vmatmul.msk.f32.vlgmr.msra.gmra.mxu2 %vm429_vm9, %v971_v55  ;;  %v981_v60 = vsel %vm406_vm2, %v967_v58, %v966_v51  ;;  %vm2382_vm2 = vmmov %vm2379_vm6 }
 0x37c   :  { %1355 = vmatpush.msrb.mxu0 %v1007_v6  ;;  %v982_v11 = vsel %vm408_vm3, %v968_v27, %v981_v60  ;;  %vm2384_vm3 = vmmov %vm2381_vm15 }
 0x380   :  { %v945_v53 = vpop.permute.xlu1 %944 }
 0x381   :  { %v969_v28 = vperm.slane %v945_v53, %v1801_v9 }
 0x383   :  { %1479 = vmatmul.msk.f32.vlgmr.msrb.gmra.mxu3 %vm429_vm9, %v969_v28  ;;  %1480 = vmatmul.msk.f32.vlgmr.msra.gmra.mxu0 %vm429_vm9, %v970_v0  ;;  %v983_v54 = vsel %vm410_vm4, %v969_v28, %v982_v11  ;;  %vm1360_vm4 = vcmask 516096  }
 0x384   :  { %v984_v42 = vsel %vm412_vm5, %v970_v0, %v983_v54 }
 0x385   :  { %v985_v5 = vsel %vm2382_vm2, %v971_v55, %v984_v42 }
 0x388   :  { %v954_v56 = vpop.permute.xlu1 %953 }
 0x389   :  { %v972_v18 = vperm.slane %v954_v56, %v1801_v9 }
 0x38b   :  { %v986_v61 = vsel %vm2383_vm10, %v972_v18, %v985_v5  ;;  %1482 = vmatmul.msk.f32.vlgmr.msra.gmra.mxu3 %vm429_vm9, %v972_v18  ;;  %1483 = vmatmul.msk.f32.vlgmr.msrb.gmra.mxu0 %vm429_vm9, %v973_v8 }
 0x38c   :  { %v987_v24 = vsel %vm2384_vm3, %v973_v8, %v986_v61 }
 0x38d   :  { %991 = vst.msk [vmem:[%s2352_s4 + $0x8] sm:$0xff] %vm429_vm9, %v987_v24  ;;  %s1643_s4 = smov [#allocation2]  }
 0x38e   :  { %s1383_s18 = sshll.u32 %s1643_s4, 4  ;;  %s1384_s18 = int_to_ptr.vmem [resolvable:$true] %s1383_s18 }
 0x3ac   :  { %v1159_v57 = vpop.f32.mrf.mxu0 }
 0x3ad   :  { %1367 = vst.msk [vmem:[#allocation2 + $0x6] sm:$0x1] %vm1360_vm4, %v1159_v57 }
 0x3c6   :  { %v1027_v9 = vpop.f32.mrf.mxu2 }
 0x3c7   :  { %1361 = vst.msk [vmem:[#allocation2] sm:$0x1] %vm1360_vm4, %v1027_v9 }
 0x3ce   :  { %v1049_v48 = vpop.f32.mrf.mxu3 }
 0x3cf   :  { %1362 = vst.msk [vmem:[#allocation2 + $0x1] sm:$0x1] %vm1360_vm4, %v1049_v48 }
 0x3d6   :  { %v1071_v15 = vpop.f32.mrf.mxu2 }
 0x3d7   :  { %1363 = vst.msk [vmem:[#allocation2 + $0x2] sm:$0x1] %vm1360_vm4, %v1071_v15 }
 0x3de   :  { %v1093_v43 = vpop.f32.mrf.mxu3 }
 0x3df   :  { %1364 = vst.msk [vmem:[#allocation2 + $0x3] sm:$0x1] %vm1360_vm4, %v1093_v43 }
 0x3e6   :  { %v1115_v4 = vpop.f32.mrf.mxu2 }
 0x3e7   :  { %1365 = vst.msk [vmem:[#allocation2 + $0x4] sm:$0x1] %vm1360_vm4, %v1115_v4 }
 0x3ee   :  { %v1137_v7 = vpop.f32.mrf.mxu3  ;;  %v1181_v13 = vpop.f32.mrf.mxu2 }
 0x3ef   :  { %1366 = vst.msk [vmem:[#allocation2 + $0x5] sm:$0x1] %vm1360_vm4, %v1137_v7 }
 0x3f0   :  { %1368 = vst.msk [vmem:[#allocation2 + $0x7] sm:$0x1] %vm1360_vm4, %v1181_v13 }
 0x3f6   :  { %v1203_v3 = vpop.f32.mrf.mxu3  ;;  %v1247_v20 = vpop.f32.mrf.mxu2 }
 0x3f7   :  { %1369 = vst.msk [vmem:[#allocation2 + $0x8] sm:$0x1] %vm1360_vm4, %v1203_v3 }
 0x3f8   :  { %1371 = vst.msk [vmem:[#allocation2 + $0xa] sm:$0x1] %vm1360_vm4, %v1247_v20  ;;  %v1225_v1 = vpop.f32.mrf.mxu0 }
 0x3f9   :  { %1370 = vst.msk [vmem:[#allocation2 + $0x9] sm:$0x1] %vm1360_vm4, %v1225_v1 }
 0x3fe   :  { %v1313_v25 = vpop.f32.mrf.mxu2 }
 0x3ff   :  { %1374 = vst.msk [vmem:[#allocation2 + $0xd] sm:$0x1] %vm1360_vm4, %v1313_v25 }
 0x400   :  { %v1291_v12 = vpop.f32.mrf.mxu0 }
 0x401   :  { %1373 = vst.msk [vmem:[#allocation2 + $0xc] sm:$0x1] %vm1360_vm4, %v1291_v12 }
 0x406   :  { %v1269_v22 = vpop.f32.mrf.mxu3 }
 0x407   :  { %1372 = vst.msk [vmem:[#allocation2 + $0xb] sm:$0x1] %vm1360_vm4, %v1269_v22 }
 0x408   :  { %v1357_v29 = vpop.f32.mrf.mxu0 }
 0x409   :  { %1376 = vst.msk [vmem:[#allocation2 + $0xf] sm:$0x1] %vm1360_vm4, %v1357_v29 }
 0x40e   :  { %v1335_v14 = vpop.f32.mrf.mxu3 }
 0x40f   :  { %1375 = vst.msk [vmem:[#allocation2 + $0xe] sm:$0x1] %vm1360_vm4, %v1335_v14 }
 0x410   :  { %1391 = dma.vmem_to_hbm [thread:$0]  %s1384_s18, 256, %s1386_s21, [#allocation3], %s1644_s22, %s1644_s22, %s1645_s23  }
 0x411   :  { %1640 = dma.done.wait [#allocation3], 256  }
 0x412   :  { %1641 = vsyncadd [#allocation3], 4294967040 }
 0x413   :  { %1398 = vsyncpa [#allocation3], 1 }

</bundles_post_ra>
